<compile_context>
chip_gen: v7x
topology: tpu7x:2x2x1
jax: 0.10.0
libtpu: 0.0.40
codegen_flags: <defaults>
</compile_context>

<pallas_src>
import functools

import jax
import jax.numpy as jnp
from jax.experimental import pallas as pl
from jax.experimental.pallas import tpu as pltpu

LANES = 128
OUT_ROWS = 8                  # per-split output / accumulator block is (8, 128)
SMALL_INPUT_BYTES = 1 << 20   # below this, XLA's fused reduction wins


def _round_up(a, b):
    return ((a + b - 1) // b) * b


def _pick_max_tile_rows():
    """4 MiB/input blocks on v6e/v7x; 2 MiB on v5e/unknown (16 MiB scoped VMEM)."""
    try:
        kind = jax.devices()[0].device_kind.lower()
    except Exception:
        return 4096
    if ("v6" in kind) or ("v7" in kind) or ("7x" in kind):
        return 8192
    return 4096


def _l2_kernel(x_ref, y_ref, o_ref, acc_ref, *, inner, tile_rows, valid_rows,
               need_mask):
    i = pl.program_id(1)

    @pl.when(i == 0)
    def _():
        acc_ref[...] = jnp.zeros_like(acc_ref)

    d = x_ref[...].astype(jnp.float32) - y_ref[...].astype(jnp.float32)

    def fold(dd):
        # (tile_rows, 128) -> (tile_rows//8, 8, 128) is a vreg-granular
        # regrouping; the axis-0 reduce is cross-vreg VPU adds (no XLU).
        sq = dd * dd
        return jnp.sum(sq.reshape(tile_rows // OUT_ROWS, OUT_ROWS, LANES), axis=0)

    if need_mask:
        t = pl.program_id(0) * inner + i              # global tile index
        boundary = (t + 1) * tile_rows > valid_rows   # partial or phantom tile

        @pl.when(jnp.logical_not(boundary))
        def _():  # interior tiles: unmasked fast path (steady state)
            acc_ref[...] += fold(d)

        @pl.when(boundary)
        def _():  # mask rows outside [0, valid_rows) BEFORE squaring
            row = t * tile_rows + jax.lax.broadcasted_iota(jnp.int32, d.shape, 0)
            acc_ref[...] += fold(jnp.where(row < valid_rows, d, 0.0))
    else:
        acc_ref[...] += fold(d)

    @pl.when(i == pl.num_programs(1) - 1)
    def _():
        o_ref[...] = acc_ref[...]   # (8, 128) partial; wrapper sums across splits


def l2_loss(outputs, targets, *, force_pallas=False):
    assert outputs.shape == targets.shape
    x = outputs.reshape(-1)
    y = targets.reshape(-1)
    n = x.shape[0]
    itemsize = jnp.dtype(x.dtype).itemsize

    if n == 0:
        return jnp.float32(0.0)

    # Small-input fallback: a pallas_call launch + separate partial-sum is
    # slower than a single fused XLA reduction for tiny inputs.
    if not force_pallas and n * itemsize < SMALL_INPUT_BYTES:
        return jnp.sum((x.astype(jnp.float32) - y.astype(jnp.float32)) ** 2)

    rem = n % LANES
    main = n - rem
    tail = jnp.float32(0.0)
    if rem:
        # TODO(synk): x[:main]/y[:main] materialize near-full copies (~2x HBM
        # traffic on this path); a manual-DMA variant (memory_space=pl.ANY +
        # make_async_copy with an element-granular last-chunk mask) would avoid
        # it. numel % 128 == 0 is the common case for this module, so keep it.
        tail = jnp.sum((x[main:].astype(jnp.float32)
                        - y[main:].astype(jnp.float32)) ** 2)
        x = x[:main]
        y = y[:main]
    if main == 0:
        return tail

    rows = main // LANES
    # Keep blocks sublane-tile aligned for packed dtypes (f32:8, bf16:16, i8:32).
    row_align = {4: 8, 2: 16, 1: 32}.get(itemsize, 8)
    max_tile_rows = _pick_max_tile_rows()
    # Cap near rows/4 so mid-size inputs still give >= 4 tiles (pipeline depth
    # and both v7x TensorCores); never below one aligned sublane group.
    tile_rows = min(max_tile_rows, _round_up(pl.cdiv(rows, 4), row_align))
    num_tiles = pl.cdiv(rows, tile_rows)
    nsplit = 2 if num_tiles >= 2 else 1      # outer 'parallel' axis (v7x: 2 TCs)
    inner = pl.cdiv(num_tiles, nsplit)
    need_mask = (nsplit * inner * tile_rows) != rows

    x2d = x.reshape(rows, LANES)
    y2d = y.reshape(rows, LANES)

    kernel = functools.partial(
        _l2_kernel, inner=inner, tile_rows=tile_rows, valid_rows=rows,
        need_mask=need_mask)

    # Clamp so phantom tiles (masked to zero in-kernel) never index past the end.
    def in_map(s, i):
        return (jnp.minimum(s * inner + i, num_tiles - 1), 0)

    partials = pl.pallas_call(
        kernel,
        out_shape=jax.ShapeDtypeStruct((OUT_ROWS * nsplit, LANES), jnp.float32),
        grid_spec=pltpu.PrefetchScalarGridSpec(
            num_scalar_prefetch=0,
            grid=(nsplit, inner),
            in_specs=[
                pl.BlockSpec((tile_rows, LANES), in_map),
                pl.BlockSpec((tile_rows, LANES), in_map),
            ],
            out_specs=pl.BlockSpec((OUT_ROWS, LANES), lambda s, i: (s, 0)),
            scratch_shapes=[pltpu.VMEM((OUT_ROWS, LANES), jnp.float32)],
        ),
        compiler_params=pltpu.CompilerParams(
            dimension_semantics=("parallel", "arbitrary"),
        ),
        cost_estimate=pl.CostEstimate(
            flops=3 * main,
            transcendentals=0,
            bytes_accessed=2 * main * itemsize + OUT_ROWS * nsplit * LANES * 4,
        ),
    )(x2d, y2d)

    return jnp.sum(partials) + tail


if __name__ == "__main__":
    key = jax.random.PRNGKey(0)
    k1, k2 = jax.random.split(key)
    shape = (2, 4, 16, 16)  # NCHW example, matches typical conv outputs
    outputs = jax.random.normal(k1, shape, dtype=jnp.float32)
    targets = jax.random.normal(k2, shape, dtype=jnp.float32)

    ref = jnp.sum((outputs - targets) ** 2)

    # Force the Pallas path (this input is below the small-input fallback
    # threshold) so the kernel itself is compiled and executed.
    loss = jax.block_until_ready(l2_loss(outputs, targets, force_pallas=True))
    assert jnp.allclose(loss, ref, rtol=1e-5, atol=1e-5), (loss, ref)

    # Default path (small-input fallback) must agree as well.
    loss_fb = jax.block_until_ready(l2_loss(outputs, targets))
    assert jnp.allclose(loss_fb, ref, rtol=1e-5, atol=1e-5), (loss_fb, ref)

    print("KERNEL_OK")
</pallas_src>

<mosaic_0001>
module attributes {stable_mosaic.version = 11 : i64} {
  func.func @_l2_kernel(%arg0: i32, %arg1: i32, %arg2: memref<8x128xf32, #tpu.memory_space<vmem>>, %arg3: memref<8x128xf32, #tpu.memory_space<vmem>>, %arg4: memref<8x128xf32, #tpu.memory_space<vmem>>, %arg5: memref<8x128xf32, #tpu.memory_space<vmem>>) attributes {dimension_semantics = [#tpu.dimension_semantics<parallel>, #tpu.dimension_semantics<arbitrary>], iteration_bounds = array<i64: 2, 1>, scalar_prefetch = 0 : i64, scratch_operands = 1 : i64, tpu.core_type = #tpu.core_type<tc>, window_params = [{transform_indices = @transform_0, window_bounds = array<i64: 8, 128>}, {transform_indices = @transform_1, window_bounds = array<i64: 8, 128>}, {transform_indices = @transform_2, window_bounds = array<i64: 8, 128>}]} {
    %c0_i32 = arith.constant 0 : i32
    %0 = arith.cmpi eq, %arg1, %c0_i32 : i32
    %1 = arith.extui %0 : i1 to i32
    %c0_i32_0 = arith.constant 0 : i32
    %2 = arith.cmpi ne, %1, %c0_i32_0 : i32
    scf.if %2 {
      %cst_10 = arith.constant 0.000000e+00 : f32
      %15 = vector.broadcast %cst_10 : f32 to vector<8x128xf32>
      %c0_11 = arith.constant 0 : index
      %c0_12 = arith.constant 0 : index
      %16 = vector.load %arg5[%c0_11, %c0_12] : memref<8x128xf32, #tpu.memory_space<vmem>>, vector<8x128xf32>
      tpu.vector_store %arg5[%c0_11, %c0_12], %15 {strides = array<i32>} : memref<8x128xf32, #tpu.memory_space<vmem>>, vector<8x128xf32>,
    } else {
    }
    %c0 = arith.constant 0 : index
    %c0_1 = arith.constant 0 : index
    %3 = vector.load %arg2[%c0, %c0_1] : memref<8x128xf32, #tpu.memory_space<vmem>>, vector<8x128xf32>
    %c0_2 = arith.constant 0 : index
    %c0_3 = arith.constant 0 : index
    %4 = vector.load %arg3[%c0_2, %c0_3] : memref<8x128xf32, #tpu.memory_space<vmem>>, vector<8x128xf32>
    %5 = arith.subf %3, %4 : vector<8x128xf32>
    %c0_4 = arith.constant 0 : index
    %c0_5 = arith.constant 0 : index
    %6 = vector.load %arg5[%c0_4, %c0_5] : memref<8x128xf32, #tpu.memory_space<vmem>>, vector<8x128xf32>
    %7 = arith.mulf %5, %5 : vector<8x128xf32>
    %8 = vector.shape_cast %7 : vector<8x128xf32> to vector<1x8x128xf32>
    %cst = arith.constant dense<0.000000e+00> : vector<8x128xf32>
    %9 = vector.multi_reduction <add>, %8, %cst [0] : vector<1x8x128xf32> to vector<8x128xf32>
    %10 = arith.addf %6, %9 : vector<8x128xf32>
    %c0_6 = arith.constant 0 : index
    %c0_7 = arith.constant 0 : index
    %11 = vector.load %arg5[%c0_6, %c0_7] : memref<8x128xf32, #tpu.memory_space<vmem>>, vector<8x128xf32>
    tpu.vector_store %arg5[%c0_6, %c0_7], %10 {strides = array<i32>} : memref<8x128xf32, #tpu.memory_space<vmem>>, vector<8x128xf32>,
    %c0_i32_8 = arith.constant 0 : i32
    %12 = arith.cmpi eq, %arg1, %c0_i32_8 : i32
    %13 = arith.extui %12 : i1 to i32
    %c0_i32_9 = arith.constant 0 : i32
    %14 = arith.cmpi ne, %13, %c0_i32_9 : i32
    scf.if %14 {
      %c0_10 = arith.constant 0 : index
      %c0_11 = arith.constant 0 : index
      %15 = vector.load %arg5[%c0_10, %c0_11] : memref<8x128xf32, #tpu.memory_space<vmem>>, vector<8x128xf32>
      %c0_12 = arith.constant 0 : index
      %c0_13 = arith.constant 0 : index
      %16 = vector.load %arg4[%c0_12, %c0_13] : memref<8x128xf32, #tpu.memory_space<vmem>>, vector<8x128xf32>
      tpu.vector_store %arg4[%c0_12, %c0_13], %15 {strides = array<i32>} : memref<8x128xf32, #tpu.memory_space<vmem>>, vector<8x128xf32>,
    } else {
    }
    return
  }
  func.func @transform_0(%arg0: i32, %arg1: i32) -> (i32, i32) {
    %c1_i32 = arith.constant 1 : i32
    %0 = arith.muli %arg0, %c1_i32 : i32
    %1 = arith.addi %0, %arg1 : i32
    %c1_i32_0 = arith.constant 1 : i32
    %2 = arith.minsi %1, %c1_i32_0 : i32
    %c0_i32 = arith.constant 0 : i32
    %c0_i32_1 = arith.constant 0 : i32
    return %2, %c0_i32 : i32, i32
  }
  func.func @transform_1(%arg0: i32, %arg1: i32) -> (i32, i32) {
    %c1_i32 = arith.constant 1 : i32
    %0 = arith.muli %arg0, %c1_i32 : i32
    %1 = arith.addi %0, %arg1 : i32
    %c1_i32_0 = arith.constant 1 : i32
    %2 = arith.minsi %1, %c1_i32_0 : i32
    %c0_i32 = arith.constant 0 : i32
    %c0_i32_1 = arith.constant 0 : i32
    return %2, %c0_i32 : i32, i32
  }
  func.func @transform_2(%arg0: i32, %arg1: i32) -> (i32, i32) {
    %c0_i32 = arith.constant 0 : i32
    %c0_i32_0 = arith.constant 0 : i32
    return %arg0, %c0_i32 : i32, i32
  }
}

</mosaic_0001>

<bundles_post_ra>
// kernel: tpu_custom_call.1
= control target key start
LH: loop header
LB: loop body
LE: loop exit
PB: predicated region body
PF: predicated region fallthrough
CT: control target
= control target key end

     0   :  { %7 = vsyncpa [#allocation4], 0  ;;  %s913_s0 = inlined_call_operand.hbm [shape: f32[16,128], index: 0, kind: input, shape index: {}]   ;;  %s914_s1 = inlined_call_operand.hbm [shape: f32[16,128], index: 1, kind: input, shape index: {}]   ;;  %s915_s2 = inlined_call_operand.hbm [shape: f32[16,128], index: 2, kind: output, shape index: {}]  }
   0x1   :  { %9 = vsyncpa [#allocation4 + $0x1], 0 }
   0x2   :  { %10 = vsyncpa [#allocation7], 0 }
   0x3   :  { %12 = vsyncpa [#allocation7 + $0x1], 0 }
   0x4   :  { %13 = vsyncpa [#allocation5], 0 }
   0x5   :  { %15 = vsyncpa [#allocation5 + $0x1], 0  ;;  %s662_s9 = smov 0   ;;  %s664_s10 = smov 0  }
   0x6   :  { %s666_s11 = smov 0   ;;  %s668_s12 = smov 0  }
   0x7   :  { %s670_s13 = smov 0   ;;  %s672_s14 = smov 0  }
   0x8   :  { %s674_s15 = smov 0   ;;  %s676_s16 = smov 0  }
   0x9   :  { %s678_s17 = smov 0  }
   0xa LB: > { %s365_s18 = sadd.s32 4294967295, %s642_s17   ;;  %s366_s19 = sadd.s32 4294967294, %s642_s17   ;;  %s642_s17 = sphi %s678_s17, %s21_s17   ;;  %s638_s16 = sphi %s676_s16, %s940_s16   ;;  %s634_s15 = sphi %s674_s15, %s939_s15   ;;  %s630_s14 = sphi %s672_s14, %s938_s14   ;;  %s626_s13 = sphi %s670_s13, %s937_s13   ;;  %s622_s12 = sphi %s668_s12, %s936_s12   ;;  %s618_s11 = sphi %s666_s11, %s935_s11   ;;  %s614_s10 = sphi %s664_s10, %s934_s10   ;;  %s610_s9 = sphi %s662_s9, %s933_s9  }
   0xb   : > { %s33_s20 = sadd.s32 1, %s638_s16  ;;  %p38_p0 = scmp.lt.s32.totalorder %s638_s16, 1 }
   0xc   : > { %p35_p1 = scmp.ge.s32.totalorder %s33_s20, 2  ;;  %s46_s21 = sadd.s32 1, %s630_s14 }
   0xd   : > { %s711_s22 = scalar_select %p38_p0, %s638_s16, 1 }
   0xe   : > { %s942_s20 = smov (%p35_p1, %s33_s20), 0  ;;  %p53_p2 = scmp.ne.s32.totalorder %s630_s14, %s626_s13 }
   0xf   : > { %p54_p3 = scmp.eq.s32.totalorder %s642_s17, 0  ;;  %p41_p4 = scmp.lt.s32.totalorder %s942_s20, 1 }
  0x10   : > { %p59_p5 = scmp.ne.s32.totalorder %s626_s13, %s622_s12  ;;  %p60_p7 = scmp.eq.s32.totalorder %s365_s18, 0 }
  0x11   : > { %p720_p6 = por %p54_p3, %p53_p2  ;;  %s101_s26 = ssub.s32 %s638_s16, %s942_s20 }
  0x12   : > { %s42_s24 = scalar_select %p41_p4, %s942_s20, 1 }
  0x13   : > { %p725_p8 = por %p60_p7, %p59_p5  ;;  %p102_p9 = scmp.eq.s32.totalorder %s101_s26, 0 }
  0x14   : > { %s43_s27 = ssub.s32 %s711_s22, %s42_s24  ;;  %s104_s28 = sadd.s32 1, %s618_s11 }
  0x15   : > { %s920_s25 = scalar_select %p725_p8, 1, 0 }
  0x16   : > { %p44_p10 = scmp.eq.s32.totalorder %s43_s27, 0  ;;  %p114_p11 = scmp.ne.s32.totalorder %s618_s11, %s614_s10 }
  0x17   : > { %s734_s29 = scalar_select %p102_p9, %s618_s11, %s104_s28  }
  0x18   : > { %s737_s30 = scalar_select %p44_p10, %s630_s14, %s46_s21  }
  0x19   : > { %p115_p12 = scmp.eq.s32.totalorder %s365_s18, 1  ;;  %p120_p13 = scmp.ne.s32.totalorder %s614_s10, %s610_s9 }
  0x1a   : > { %p121_p0 = scmp.eq.s32.totalorder %s366_s19, 1  ;;  %p398_p4 = scmp.lt.s32.totalorder %s642_s17, 2 }
  0x1b   : > { %p743_p1 = por %p115_p12, %p114_p11  ;;  %s754_s5 = sand.u32 1, %s630_s14  }
  0x1c   : > { %p748_p3 = por %p121_p0, %p120_p13  ;;  %s370_s6 = sshll.u32 %s711_s22, 7 }
  0x1d   : > { %s921_s3 = scalar_select %p743_p1, 1, 0 }
  0x1e   : > { %s922_s4 = scalar_select %p748_p3, 1, 0 }
  0x1f   : > { %s916_s7 = sshll.u32 %s754_s5, 3  ;;  %s763_s18 = scalar_lea.hbm %s913_s0, %s370_s6 }
  0x20   : > { %s145_s19 = scalar_lea.vmem [#allocation3], %s916_s7  ;;  %p769_p5 = pnand %p398_p4, %p720_p6 }
  0x21   : > { %s155_s21 = sshll.u32 %s145_s19, 4  ;;  %s142_s26 = scalar_lea.sflag [#allocation4], %s754_s5  ;;  %s773_s21 = int_to_ptr.vmem [resolvable:$true] %s155_s21 }
  0x22   : > { %s472_s27 = scalar_lea.hbm %s763_s18, 128  ;;  %p474_p11 = pneg %p769_p5 }
  0x23   : > { %p473_p10 = scmp.ne.s32.totalorder %s763_s18, %s472_s27  ;;  %s477_s8 = scalar_lea.hbm %s913_s0, 256 }
  0x24   : > { %p478_p6 = scmp.lt.u32.totalorder %s763_s18, %s913_s0  ;;  %p479_p0 = scmp.lt.u32.totalorder %s477_s8, %s472_s27 }
  0x25   : > { %p475_p12 = pnand %p474_p11, %p473_p10  ;;  %p481_p2 = scmp.lt.u32.totalorder %s472_s27, %s763_s18 }
  0x26   : > { %p480_p4 = por %p479_p0, %p478_p6 }
  0x27   : > { %p476_p13 = pneg %p475_p12 }
  0x28   : > { %p482_p7 = por %p481_p2, %p480_p4 }
  0x2a   : > { %p483_p9 = pnand %p482_p7, %p476_p13 }
  0x2c   : > { %486 = shalt.err (!%p483_p9)
}
  0x2d   : > { %s487_s7 = scalar_lea.vmem %s773_s21, 128  ;;  %s644_s23 = smov [#allocation3]  }
  0x2e   : > { %p488_p10 = scmp.ne.s32.totalorder %s773_s21, %s487_s7  ;;  %s492_s28 = sshll.u32 %s644_s23, 4  ;;  %s493_s28 = int_to_ptr.vmem [resolvable:$false] %s492_s28 }
  0x2f   : > { %s494_s12 = scalar_lea.vmem %s493_s28, 256  ;;  %p495_p1 = scmp.lt.s32.totalorder %s773_s21, %s493_s28 }
  0x30   : > { %p490_p12 = pnand %p488_p10, %p474_p11  ;;  %p496_p6 = scmp.lt.s32.totalorder %s494_s12, %s487_s7 }
  0x32   : > { %p491_p3 = pneg %p490_p12  ;;  %p497_p0 = por %p496_p6, %p495_p1 }
  0x34   : > { %p498_p2 = pnand %p497_p0, %p491_p3 }
  0x36   : > { %501 = shalt.err (!%p498_p2)
}
  0x37   : > { %390 = dma.hbm_to_vmem [thread:$0]  (!%p769_p5), %s763_s18, 128, %s773_s21, %s142_s26  }
  0x38   : > { %p924_p7 = scmp.lt.s32.totalorder %s642_s17, 3  ;;  %p925_p9 = scmp.ge.s32.totalorder %s642_s17, 1 }
  0x39   : > { %s816_s19 = scalar_lea.hbm %s914_s1, %s370_s6  ;;  %s927_s23 = sshll.u32 %s754_s5, 3 }
  0x3a   : > { %p807_p13 = pnand %p925_p9, %p924_p7  ;;  %s166_s28 = scalar_lea.vmem [#allocation6], %s927_s23 }
  0x3b   : > { %s176_s12 = sshll.u32 %s166_s28, 4  ;;  %s163_s18 = scalar_lea.sflag [#allocation7], %s754_s5  ;;  %s177_s12 = int_to_ptr.vmem [resolvable:$true] %s176_s12 }
  0x3c   : > { %s926_s27 = scalar_select %p807_p13, 1, 0 }
  0x3d   : > { %s502_s21 = scalar_lea.hbm %s816_s19, 128  ;;  %s507_s6 = scalar_lea.hbm %s914_s1, 256 }
  0x3e   : > { %p503_p1 = scmp.ne.s32.totalorder %s816_s19, %s502_s21  ;;  %p508_p10 = scmp.lt.u32.totalorder %s816_s19, %s914_s1 }
  0x3f   : > { %p509_p12 = scmp.lt.u32.totalorder %s507_s6, %s502_s21  ;;  %p511_p0 = scmp.lt.u32.totalorder %s502_s21, %s816_s19 }
  0x40   : > { %p505_p3 = pnand %p503_p1, %p474_p11 }
  0x41   : > { %p510_p6 = por %p509_p12, %p508_p10 }
  0x42   : > { %p506_p4 = pneg %p505_p3 }
  0x43   : > { %p512_p2 = por %p511_p0, %p510_p6 }
  0x45   : > { %p513_p7 = pnand %p512_p2, %p506_p4 }
  0x47   : > { %516 = shalt.err (!%p513_p7)
}
  0x48   : > { %s517_s5 = scalar_lea.vmem %s177_s12, 128  ;;  %s645_s23 = smov [#allocation6]  }
  0x49   : > { %p518_p9 = scmp.ne.s32.totalorder %s177_s12, %s517_s5  ;;  %s522_s28 = sshll.u32 %s645_s23, 4  ;;  %s523_s28 = int_to_ptr.vmem [resolvable:$false] %s522_s28 }
  0x4a   : > { %s524_s22 = scalar_lea.vmem %s523_s28, 256  ;;  %p525_p8 = scmp.lt.s32.totalorder %s177_s12, %s523_s28 }
  0x4b   : > { %p520_p1 = pnand %p518_p9, %p474_p11  ;;  %p526_p13 = scmp.lt.s32.totalorder %s524_s22, %s517_s5 }
  0x4d   : > { %p521_p3 = pneg %p520_p1  ;;  %p527_p10 = por %p526_p13, %p525_p8 }
  0x4f   : > { %p528_p12 = pnand %p527_p10, %p521_p3 }
  0x51   : > { %531 = shalt.err (!%p528_p12)
}
  0x52   : > { %393 = dma.hbm_to_vmem [thread:$0]  (!%p769_p5), %s816_s19, 128, %s177_s12, %s163_s18  }
  0x53   : > { %p928_p4 = scmp.ne.s32.totalorder %s926_s27, 0 }
  0x54   : > { %s187_s21 = sand.u32 (!%p928_p4), 1, %s626_s13   ;;  %p929_p11 = scmp.ne.s32.totalorder (!%p928_p4), %s920_s25, 0 }
  0x55   : > { %185 = sbr.rel (%p928_p4) target bundleno = 121 (0x79), region = 28  ;;  %s374_s26 = sshll.u32 (!%p928_p4), %s187_s21, 3 }
  0x56   : > { %s188_s6 = scalar_lea.sflag (!%p928_p4), [#allocation4], %s187_s21  ;;  %s191_s7 = scalar_lea.vmem (!%p928_p4), [#allocation3], %s374_s26 }
  0x5c   : > { %597 = dma.done.wait (%p929_p11), %s188_s6, 128  }
  0x5d   : > { %599 = vsyncadd (%p929_p11), %s188_s6, 4294967168  ;;  %s197_s8 = scalar_lea.sflag [#allocation7], %s187_s21  ;;  %s200_s5 = scalar_lea.vmem [#allocation6], %s374_s26 }
  0x5e   : > { %601 = dma.done.wait (%p929_p11), %s197_s8, 128  }
  0x5f   : > { %603 = vsyncadd (%p929_p11), %s197_s8, 4294967168  ;;  %s223_s24 = sand.u32 1, %s614_s10   ;;  %v237_v0 = vld [vmem:[%s191_s7] sm:$0xff]  ;;  %v238_v1 = vld [vmem:[%s200_s5] sm:$0xff]  ;;  %s378_s18 = sshll.u32 %s634_s15, 7 }
  0x60   : > { %s376_s27 = sshll.u32 %s223_s24, 3  ;;  %v239_v2 = vsub.f32 %v237_v0, %v238_v1  ;;  %s858_s25 = scalar_lea.hbm %s915_s2, %s378_s18 }
  0x61   : > { %s225_s19 = scalar_lea.vmem [#allocation8], %s376_s27  ;;  %s251_s22 = scalar_lea.sflag [#allocation5], %s223_s24 }
  0x62   : > { %s264_s12 = sshll.u32 %s225_s19, 4  ;;  %v241_v3 = vmul.f32 %v239_v2, %v239_v2  ;;  %p930_p5 = scmp.ne.s32.totalorder %s921_s3, 0  ;;  %s853_s12 = int_to_ptr.vmem [resolvable:$true] %s264_s12 }
  0x63   : > { %s532_s21 = scalar_lea.vmem %s853_s12, 128  ;;  %s646_s15 = smov [#allocation8]  }
  0x64   : > { %249 = vst [vmem:[%s225_s19] sm:$0xff] %v241_v3  ;;  %p533_p8 = scmp.ne.s32.totalorder %s853_s12, %s532_s21  ;;  %s536_s26 = sshll.u32 %s646_s15, 4  ;;  %s537_s26 = int_to_ptr.vmem [resolvable:$false] %s536_s26 }
  0x65   : > { %s538_s6 = scalar_lea.vmem %s537_s26, 256  ;;  %p539_p0 = scmp.lt.s32.totalorder %s853_s12, %s537_s26 }
  0x66   : > { %p534_p13 = pnand %p533_p8, %p930_p5  ;;  %p540_p2 = scmp.lt.s32.totalorder %s538_s6, %s532_s21 }
  0x68   : > { %p535_p6 = pneg %p534_p13  ;;  %p541_p7 = por %p540_p2, %p539_p0 }
  0x6a   : > { %p542_p9 = pnand %p541_p7, %p535_p6 }
  0x6c   : > { %545 = shalt.err (!%p542_p9)
}
  0x6d   : > { %s546_s7 = scalar_lea.hbm %s858_s25, 128  ;;  %s550_s24 = scalar_lea.hbm %s915_s2, 256 }
  0x6e   : > { %p547_p1 = scmp.ne.s32.totalorder %s858_s25, %s546_s7  ;;  %p551_p12 = scmp.lt.u32.totalorder %s858_s25, %s915_s2 }
  0x6f   : > { %p552_p4 = scmp.lt.u32.totalorder %s550_s24, %s546_s7  ;;  %p554_p8 = scmp.lt.u32.totalorder %s546_s7, %s858_s25 }
  0x70   : > { %p548_p3 = pnand %p547_p1, %p930_p5 }
  0x71   : > { %p553_p11 = por %p552_p4, %p551_p12 }
  0x72   : > { %p549_p10 = pneg %p548_p3 }
  0x73   : > { %p555_p13 = por %p554_p8, %p553_p11 }
  0x75   : > { %p556_p6 = pnand %p555_p13, %p549_p10 }
  0x77   : > { %559 = shalt.err (!%p556_p6)
}
  0x78   : > { %385 = dma.vmem_to_hbm [thread:$0]  (%p930_p5), %s853_s12, 128, %s858_s25, %s251_s22  }
  0x79 PF: > { %s276_s18 = sand.u32 1, %s610_s9   ;;  %p931_p0 = scmp.ne.s32.totalorder %s922_s4, 0 }
  0x7a   : > { %p932_p2 = scmp.ge.s32.totalorder %s642_s17, 2  ;;  %s277_s23 = scalar_lea.sflag [#allocation5], %s276_s18 }
  0x7c   : > { %p395_p7 = pnand %p932_p2, %p931_p0 }
  0x7e   : > { %605 = dma.done.wait (!%p395_p7), %s277_s23, 128  }
  0x7f   : > { %607 = vsyncadd (!%p395_p7), %s277_s23, 4294967168  ;;  %s21_s17 = sadd.s32 1, %s642_s17   ;;  %s933_s9 = smov %s614_s10 }
  0x80   : > { %p18_p9 = scmp.ge.s32.totalorder %s21_s17, 4   ;;  %s934_s10 = smov %s618_s11 }
  0x81   : > { %s935_s11 = smov %s734_s29  ;;  %s936_s12 = smov %s626_s13 }
  0x82   : > { %s937_s13 = smov %s630_s14  ;;  %s938_s14 = smov %s737_s30 }
  0x83   : > { %s939_s15 = smov %s638_s16  ;;  %s940_s16 = smov %s942_s20 }
  0x84   :  { %20 = sbr.rel (!%p18_p9) target bundleno = 10 (0xa), region = 94 }
  0x8b   :  { %282 = vsyncpa [#allocation4], 1 }
  0x8c   :  { %284 = vsyncpa [#allocation4 + $0x1], 1 }
  0x8d   :  { %285 = vsyncpa [#allocation7], 1 }
  0x8e   :  { %287 = vsyncpa [#allocation7 + $0x1], 1 }
  0x8f   :  { %288 = vsyncpa [#allocation5], 1 }
  0x90   :  { %290 = vsyncpa [#allocation5 + $0x1], 1 }

</bundles_post_ra>
